<compile_context>
chip_gen: v7x
topology: tpu7x:2x2x1
jax: 0.10.0
libtpu: 0.0.40
codegen_flags: <defaults>
</compile_context>

<pallas_src>
import jax
import jax.numpy as jnp
from jax.experimental import pallas as pl
from jax.experimental.pallas import tpu as pltpu


def _round_up(x: int, m: int) -> int:
    return ((x + m - 1) // m) * m


def _make_kernel(approx_reciprocal: bool):
    """Kernel over a lane-dense (F, TBL) block: softmax along the sublane axis."""

    def kernel(a_ref, b_ref, o_ref):
        # Add in the native input dtype (VPU), upcast once for the softmax chain.
        # (On v6e/v7x with bf16 inputs the whole chain could stay bf16; f32 is
        #  kept for accuracy parity and because v5e has no bf16 VPU/EUP.)
        s = (a_ref[...] + b_ref[...]).astype(jnp.float32)
        m = jnp.max(s, axis=0, keepdims=True)          # (1, TBL) sublane reduce (XLU)
        e = jnp.exp(s - m)                             # EUP, full 128-lane rows
        denom = jnp.sum(e, axis=0, keepdims=True)      # (1, TBL) sublane reduce (XLU)
        if approx_reciprocal:
            inv = pl.reciprocal(denom, approx=True)    # EUP vrcp
            inv = inv * (2.0 - denom * inv)            # one Newton-Raphson step
        else:
            inv = 1.0 / denom                          # exact (default / validated)
        o_ref[...] = (e * inv).astype(o_ref.dtype)

    return kernel


def naive_sum_softmax_t(x0t: jax.Array, x1t: jax.Array, *,
                        approx_reciprocal: bool = False,
                        vmem_budget_bytes: int = 8 << 20) -> jax.Array:
    """softmax(x0t + x1t, axis=0) on already-transposed [F, B] inputs.

    This is the lane-dense entry point: batch lives in the lane dimension, the
    softmax axis (F) in the sublane dimension.  Returns [F, B].
    """
    assert x0t.shape == x1t.shape and x0t.dtype == x1t.dtype
    assert x0t.ndim == 2
    F, B = x0t.shape
    kernel = _make_kernel(approx_reciprocal)
    out_shape = jax.ShapeDtypeStruct((F, B), x0t.dtype)

    if B <= 512:
        # Single block: block_shape == full dims (exempt from (8,128) rule).
        spec = pl.BlockSpec((F, B), lambda: (0, 0))
        return pl.pallas_call(
            kernel,
            out_shape=out_shape,
            grid=(),
            in_specs=[spec, spec],
            out_specs=spec,
        )(x0t, x1t)

    # Per-lane-column VMEM cost: 2 inputs + 1 output, double-buffered (= 6
    # copies), with F padded to a sublane multiple of 8, plus the two f32
    # intermediates (s, e) of the in-kernel softmax chain.
    itemsize = jnp.dtype(x0t.dtype).itemsize
    f_pad = max(8, _round_up(F, 8))
    per_col_bytes = 6 * f_pad * itemsize + 2 * f_pad * 4
    tbl_vmem = max(128, (vmem_budget_bytes // per_col_bytes // 128) * 128)

    # Target ~4 grid steps so both v7x TensorCores get work under "parallel";
    # never exceed the VMEM-derived cap.  TBL is a multiple of 128 lanes so the
    # output store is a full-width (unmasked) vst.
    target_steps = 4
    tbl = min(tbl_vmem, max(128, _round_up(pl.cdiv(B, target_steps), 128)))
    grid = (pl.cdiv(B, tbl),)

    spec = pl.BlockSpec((F, tbl), lambda i: (0, i))
    return pl.pallas_call(
        kernel,
        out_shape=out_shape,
        grid=grid,
        in_specs=[spec, spec],
        out_specs=spec,
        compiler_params=pltpu.CompilerParams(
            dimension_semantics=("parallel",)),
    )(x0t, x1t)


def naive_sum_softmax(x0: jax.Array, x1: jax.Array, *,
                      force_pallas: bool = False,
                      approx_reciprocal: bool = False,
                      vmem_budget_bytes: int = 8 << 20) -> jax.Array:
    """softmax(x0 + x1, axis=-1) for [B, F] inputs (module forward semantics)."""
    assert x0.shape == x1.shape and x0.dtype == x1.dtype
    assert x0.ndim == 2
    B, F = x0.shape

    # Tiny shapes (the module's real 8x10 case): custom-call launch overhead
    # dominates, so take the fused XLA softmax unless the Pallas path is forced.
    if not force_pallas and B * F < 4096:
        return jax.nn.softmax(x0 + x1, axis=-1)

    # Lane-dense path: present [F, B] to the kernel.  If the surrounding graph
    # can produce/consume the transposed layout directly, call
    # naive_sum_softmax_t and these two transposes (plus the one on the output)
    # disappear.
    out_t = naive_sum_softmax_t(
        x0.T, x1.T,
        approx_reciprocal=approx_reciprocal,
        vmem_budget_bytes=vmem_budget_bytes)
    return out_t.T


def _init_unused_linear_params(key):
    # Mirror nn.Linear(10, 10) init deterministically.  NOT used in forward,
    # matching the PyTorch module; kept only for parameter parity.
    kw, kb = jax.random.split(key)
    bound = 1.0 / jnp.sqrt(10.0)
    w = jax.random.uniform(kw, (10, 10), jnp.float32, -bound, bound)
    b = jax.random.uniform(kb, (10,), jnp.float32, -bound, bound)
    return w, b


if __name__ == "__main__":
    key = jax.random.PRNGKey(0)
    k0, k1, k2, k3, k4, k5, klin = jax.random.split(key, 7)

    _w_unused, _b_unused = _init_unused_linear_params(klin)  # parity with __init__

    # --- Small shape consistent with the module (two [batch, 10] logit tensors). ---
    B, F = 8, 10
    x0 = jax.random.normal(k0, (B, F), jnp.float32)
    x1 = jax.random.normal(k1, (B, F), jnp.float32)
    ref = jax.nn.softmax(x0 + x1, axis=-1)

    # Force the Pallas kernel at the tiny shape to validate it (single block).
    out = jax.block_until_ready(naive_sum_softmax(x0, x1, force_pallas=True))
    assert out.shape == (B, F)
    assert jnp.allclose(out, ref, atol=1e-6, rtol=1e-6)
    assert jnp.allclose(jnp.sum(out, axis=-1), 1.0, atol=1e-5)

    # Default path at the tiny shape: fused XLA softmax bypass (no custom call).
    out_bypass = jax.block_until_ready(naive_sum_softmax(x0, x1))
    assert jnp.allclose(out_bypass, ref, atol=1e-6, rtol=1e-6)

    # --- Larger batch: lane-dense multi-step grid, batch tile multiple of 128. ---
    Bb = 4096
    y0 = jax.random.normal(k2, (Bb, F), jnp.float32)
    y1 = jax.random.normal(k3, (Bb, F), jnp.float32)
    out_big = jax.block_until_ready(naive_sum_softmax(y0, y1))
    ref_big = jax.nn.softmax(y0 + y1, axis=-1)
    assert out_big.shape == (Bb, F)
    assert jnp.allclose(out_big, ref_big, atol=1e-6, rtol=1e-6)
    assert jnp.allclose(jnp.sum(out_big, axis=-1), 1.0, atol=1e-5)

    # --- Ragged batch (B not a multiple of the lane tile): partial final block. ---
    Br = 1000
    z0 = jax.random.normal(k4, (Br, F), jnp.float32)
    z1 = jax.random.normal(k5, (Br, F), jnp.float32)
    out_ragged = jax.block_until_ready(naive_sum_softmax(z0, z1))
    ref_ragged = jax.nn.softmax(z0 + z1, axis=-1)
    assert out_ragged.shape == (Br, F)
    assert jnp.allclose(out_ragged, ref_ragged, atol=1e-6, rtol=1e-6)

    print("KERNEL_OK")
</pallas_src>

<mosaic_0001>
module attributes {stable_mosaic.version = 11 : i64} {
  func.func @kernel(%arg0: memref<10x8xf32, #tpu.memory_space<vmem>>, %arg1: memref<10x8xf32, #tpu.memory_space<vmem>>, %arg2: memref<10x8xf32, #tpu.memory_space<vmem>>) attributes {dimension_semantics = [], scalar_prefetch = 0 : i64, scratch_operands = 0 : i64, tpu.core_type = #tpu.core_type<tc>} {
    %c0 = arith.constant 0 : index
    %c0_0 = arith.constant 0 : index
    %0 = vector.load %arg0[%c0, %c0_0] : memref<10x8xf32, #tpu.memory_space<vmem>>, vector<10x8xf32>
    %c0_1 = arith.constant 0 : index
    %c0_2 = arith.constant 0 : index
    %1 = vector.load %arg1[%c0_1, %c0_2] : memref<10x8xf32, #tpu.memory_space<vmem>>, vector<10x8xf32>
    %2 = arith.addf %0, %1 : vector<10x8xf32>
    %cst = arith.constant dense<0xFF800000> : vector<8xf32>
    %3 = vector.multi_reduction <maximumf>, %2, %cst [0] : vector<10x8xf32> to vector<8xf32>
    %4 = vector.shape_cast %3 : vector<8xf32> to vector<1x8xf32>
    %5 = vector.broadcast %4 : vector<1x8xf32> to vector<10x8xf32>
    %6 = arith.subf %2, %5 : vector<10x8xf32>
    %7 = math.exp %6 : vector<10x8xf32>
    %cst_3 = arith.constant dense<0.000000e+00> : vector<8xf32>
    %8 = vector.multi_reduction <add>, %7, %cst_3 [0] : vector<10x8xf32> to vector<8xf32>
    %9 = vector.shape_cast %8 : vector<8xf32> to vector<1x8xf32>
    %cst_4 = arith.constant 1.000000e+00 : f32
    %10 = vector.broadcast %cst_4 : f32 to vector<1x8xf32>
    %11 = arith.divf %10, %9 : vector<1x8xf32>
    %12 = vector.broadcast %11 : vector<1x8xf32> to vector<10x8xf32>
    %13 = arith.mulf %7, %12 : vector<10x8xf32>
    %c0_5 = arith.constant 0 : index
    %c0_6 = arith.constant 0 : index
    %14 = vector.load %arg2[%c0_5, %c0_6] : memref<10x8xf32, #tpu.memory_space<vmem>>, vector<10x8xf32>
    tpu.vector_store %arg2[%c0_5, %c0_6], %13 {strides = array<i32>} : memref<10x8xf32, #tpu.memory_space<vmem>>, vector<10x8xf32>,
    return
  }
}

</mosaic_0001>

<bundles_post_ra>
// kernel: tpu_custom_call.1
= control target key start
LH: loop header
LB: loop body
LE: loop exit
PB: predicated region body
PF: predicated region fallthrough
CT: control target
= control target key end

     0   :  { %vm17_vm0 = vcmask 64512   ;;  %vm19_vm1 = vcmask 58368   ;;  %s98_s0 = inlined_call_operand.vmem [shape: f32[10,8], index: 0, kind: input, shape index: {}]   ;;  %s99_s1 = inlined_call_operand.vmem [shape: f32[10,8], index: 1, kind: input, shape index: {}]   ;;  %s100_s2 = inlined_call_operand.vmem [shape: f32[10,8], index: 2, kind: output, shape index: {}]  }
   0x1   :  { %v11_v0 = vld [vmem:[%s98_s0] sm:$0xff]  ;;  %v12_v1 = vld [vmem:[%s98_s0 + $0x8] sm:$0x3] }
   0x2   :  { %v13_v2 = vld [vmem:[%s99_s1] sm:$0xff]  ;;  %v14_v3 = vld [vmem:[%s99_s1 + $0x8] sm:$0x3] }
   0x3   :  { %v15_v4 = vadd.f32 %v13_v2, %v11_v0  ;;  %v16_v5 = vadd.f32 %v14_v3, %v12_v1 }
   0x5   :  { %v18_v6 = vsel %vm17_vm0, %v15_v4, -inf  ;;  %v20_v7 = vsel %vm19_vm1, %v16_v5, -inf }
   0x6   :  { %v21_v8 = vmax.f32 %v18_v6, %v20_v7 }
   0x8   :  { %v22_v9 = vrot.slane %v21_v8, 4 }
   0xa   :  { %v23_v10 = vmax.f32 %v21_v8, %v22_v9 }
   0xc   :  { %v24_v11 = vrot.slane %v23_v10, 2 }
   0xe   :  { %v25_v12 = vmax.f32 %v23_v10, %v24_v11 }
  0x10   :  { %v26_v13 = vrot.slane %v25_v12, 1 }
  0x12   :  { %v27_v14 = vmax.f32 %v25_v12, %v26_v13 }
  0x14   :  { %v28_v15 = vsub.f32 %v15_v4, %v27_v14  ;;  %v29_v16 = vsub.f32 %v16_v5, %v27_v14 }
  0x16   :  { %v30_v17 = vmul.f32 1.442695, %v28_v15  ;;  %v32_v18 = vmul.f32 1.442695, %v29_v16 }
  0x18   :  { %53 = vpow2.f32 %v30_v17 }
  0x19   :  { %55 = vpow2.f32 %v32_v18 }
  0x22   :  { %v54_v19 = vpop.eup %53 }
  0x23   :  { %v56_v20 = vpop.eup %55  ;;  %v34_v21 = vsel %vm17_vm0, %v54_v19, 0.0 }
  0x24   :  { %v35_v22 = vsel %vm19_vm1, %v56_v20, 0.0 }
  0x25   :  { %v36_v23 = vadd.f32 %v35_v22, %v34_v21 }
  0x27   :  { %v37_v24 = vrot.slane %v36_v23, 4 }
  0x29   :  { %v38_v25 = vadd.f32 %v37_v24, %v36_v23 }
  0x2b   :  { %v39_v26 = vrot.slane %v38_v25, 2 }
  0x2d   :  { %v40_v27 = vadd.f32 %v39_v26, %v38_v25 }
  0x2f   :  { %v41_v28 = vrot.slane %v40_v27, 1 }
  0x31   :  { %v42_v29 = vadd.f32 %v41_v28, %v40_v27 }
  0x33   :  { %57 = vrcp.f32 %v42_v29 }
  0x3d   :  { %v58_v30 = vpop.eup %57 }
  0x3e   :  { %v45_v31 = vmul.f32 %v58_v30, %v54_v19  ;;  %v46_v32 = vmul.f32 %v58_v30, %v56_v20 }
  0x40   :  { %47 = vst.msk [vmem:[%s100_s2] sm:$0xff] %vm17_vm0, %v45_v31 }
  0x41   :  { %48 = vst.msk [vmem:[%s100_s2 + $0x8] sm:$0x3] %vm19_vm1, %v46_v32 }

</bundles_post_ra>
